<compile_context>
chip_gen: v7x
topology: tpu7x:2x2x1
jax: 0.10.0
libtpu: 0.0.40
codegen_flags: <defaults>
</compile_context>

<pallas_src>
import functools
import math

import jax
import jax.numpy as jnp
import numpy as np
from jax.experimental import pallas as pl
from jax.experimental.pallas import tpu as pltpu

# ----------------- module hyper-parameters (small synthetic sizes) -----------------
N_HEAD = 4
D_MODEL = 32
D_K = 8                      # d_v == d_k in this module (w_vs outputs n_head * d_k)
HD = N_HEAD * D_K            # heads packed on the lane axis
DROPOUT = 0.0                # eval-mode / p=0 -> identity
NORMALIZE_BEFORE = False     # post-LayerNorm variant
EPS = 1e-6

BSZ = 2
SEQ = 8
WIN = 2                      # synthetic sliding-window neighborhood half-width
M = 2 * WIN + 1              # neighbors per query position (q_k_mask.shape[1])


# ----------------------------- mask / glue construction ----------------------------
def make_masks(seq_len: int, win: int):
    """Deterministic pyramidal-style (banded) neighbor lists; -1 marks an invalid slot."""
    q_k = [[(i + off) if 0 <= i + off < seq_len else -1
            for off in range(-win, win + 1)] for i in range(seq_len)]
    k_q = [[-1] * (2 * win + 1) for _ in range(seq_len)]
    for i in range(seq_len):
        for j in range(2 * win + 1):
            p = q_k[i][j]
            if p >= 0:
                k_q[p][2 * win - j] = i
    return jnp.array(q_k, jnp.int32), jnp.array(k_q, jnp.int32)


def banded_valid_mask_lanes(q_k_mask, win: int, bsz: int):
    """Check q_k_mask is the sliding-window band assumed by the in-kernel pltpu.roll
    gather and return the {0,1} validity mask, lane-expanded to HD lanes per slot and
    tiled over the flattened batch rows (built entirely on the host)."""
    qk = np.asarray(q_k_mask)
    seq_len, m = qk.shape
    assert m == 2 * win + 1
    for i in range(seq_len):
        for j in range(m):
            tgt = i + (j - win)
            expect = tgt if 0 <= tgt < seq_len else -1
            assert int(qk[i, j]) == expect, "q_k_mask is not a sliding-window band"
    # TODO(synk): a general (non-banded) pyramidal q_k_mask needs a gather path
    # (scalar-prefetch / Element index_map or a blocked one-hot matmul) instead of roll.
    valid = (qk >= 0).astype(np.float32)                     # (seq, m)
    valid_hd = np.repeat(valid, HD, axis=1)                  # (seq, m*HD) lane-expanded
    return jnp.asarray(np.tile(valid_hd, (bsz, 1)))          # (bsz*seq, m*HD)


def build_structural_constants(wfc):
    """Block-diagonal head-sum / broadcast matrices and the row-tiled fc weight,
    built with numpy on the host (passed to the kernel as tiny VMEM inputs)."""
    hs = np.kron(np.eye(N_HEAD, dtype=np.float32),
                 np.ones((D_K, 1), np.float32))              # (HD, H): per-head lane sum
    hs_block = np.kron(np.eye(M, dtype=np.float32), hs)      # (M*HD, M*H)
    head_tile = np.tile(np.eye(N_HEAD, dtype=np.float32), (1, M))   # (H, M*H): bcast over slots
    wfct = jnp.tile(wfc, (M, 1))                             # (M*HD, D_MODEL): fc + slot sum
    return (jnp.asarray(hs_block), jnp.asarray(hs_block.T),
            jnp.asarray(head_tile), wfct)


@functools.lru_cache(maxsize=None)
def roll_matches_jnp() -> bool:
    """Resolve pltpu.roll's rotation convention once, WITHOUT launching a TPU kernel:
    tiny probe in interpret mode (host-side); if interpret mode cannot evaluate the
    primitive, fall back to the documented jnp.roll convention."""
    def probe(x_ref, o_ref):
        o_ref[...] = pltpu.roll(x_ref[...], 1, axis=0)
    try:
        x = jnp.broadcast_to(jnp.arange(8, dtype=jnp.float32)[:, None], (8, 128))
        out = pl.pallas_call(
            probe, out_shape=jax.ShapeDtypeStruct((8, 128), jnp.float32),
            interpret=True)(x)
        return bool(out[0, 0] == 7.0)    # jnp.roll(x, 1)[0] == x[-1]
    except Exception:                    # pragma: no cover - interpret path unavailable
        return True


# ----------------------------------- Pallas kernel ----------------------------------
def pam_kernel(x_ref, wqkv_ref, wfct_ref, vecs_ref, valid_ref,
               hsum_ref, hbc_ref, htile_ref, o_ref,
               qk_scr, v_scr, *, shifts, matmul_dtype):
    x = x_ref[...]                            # (SEQ, D_MODEL) f32: one batch element
    vecs = vecs_ref[...]                      # (3, D_MODEL): [fc bias, ln gamma, ln beta]
    bfc, gamma, beta = vecs[0:1], vecs[1:2], vecs[2:3]

    def layer_norm(t):
        mu = jnp.mean(t, axis=-1, keepdims=True)
        var = jnp.mean((t - mu) ** 2, axis=-1, keepdims=True)
        return (t - mu) * jax.lax.rsqrt(var + EPS) * gamma + beta

    wqkv = wqkv_ref[...]                      # (D_MODEL, 3*HD); 1/sqrt(d_k) folded into Q

    if NORMALIZE_BEFORE:
        # q uses LayerNorm(x); k/v use raw x -> cannot fuse the Q projection with K/V.
        q = jnp.dot(layer_norm(x).astype(matmul_dtype), wqkv[:, :HD],
                    preferred_element_type=jnp.float32)
        kv = jnp.dot(x.astype(matmul_dtype), wqkv[:, HD:],
                     preferred_element_type=jnp.float32)           # (SEQ, 2*HD)
    else:
        qkv = jnp.dot(x.astype(matmul_dtype), wqkv,
                      preferred_element_type=jnp.float32)          # (SEQ, 3*HD)
        q, kv = qkv[:, :HD], qkv[:, HD:]

    # Banded K/V gather: ONE packed K|V roll per nonzero neighbor offset (XLU slot);
    # results packed as dense (SEQ, M*HD) slabs in VMEM scratch.  Wrap-around rows are
    # zeroed below by the lane-expanded validity mask, reproducing graph_mm_tvm's
    # padding-0 semantics (invalid slot -> score exactly 0, zero value contribution).
    for j, shift in enumerate(shifts):
        kvj = pltpu.roll(kv, shift, axis=0) if shift else kv
        qk_scr[:, j * HD:(j + 1) * HD] = q * kvj[:, :HD]
        v_scr[:, j * HD:(j + 1) * HD] = kvj[:, HD:]

    valid = valid_ref[...]                    # (SEQ, M*HD) in {0,1}, lane-expanded on host
    qk_all = qk_scr[...] * valid              # masked q*k_gathered, all slots (full-vreg VPU)
    v_all = v_scr[...] * valid                # masked gathered values, all slots

    # Per-(slot, head) scores with ONE block-diagonal head-sum matmul (K = M*HD).
    scores = jnp.dot(qk_all, hsum_ref[...],
                     preferred_element_type=jnp.float32)           # (SEQ, M*N_HEAD)

    # Softmax over the M neighbor slots per (row, head) — matches F.softmax(dim=-1)
    # with masked slots scoring exactly 0 (graph_mm_tvm padding semantics).
    m_max = scores[:, :N_HEAD]
    for j in range(1, M):
        m_max = jnp.maximum(m_max, scores[:, j * N_HEAD:(j + 1) * N_HEAD])
    m_bcast = jnp.dot(m_max, htile_ref[...], preferred_element_type=jnp.float32)
    exp_all = jnp.exp(scores - m_bcast)       # one dense EUP push on (SEQ, M*N_HEAD)
    denom = exp_all[:, :N_HEAD]
    for j in range(1, M):
        denom = denom + exp_all[:, j * N_HEAD:(j + 1) * N_HEAD]
    inv = pl.reciprocal(denom, approx=True)   # EUP slot
    inv_bcast = jnp.dot(inv, htile_ref[...], preferred_element_type=jnp.float32)
    w_all = exp_all * inv_bcast               # (SEQ, M*N_HEAD) softmax weights
    # dropout_attn with p=0 -> identity

    # Broadcast weights back to HD lanes per slot (block-diag matmul), weight the
    # gathered values, and fold the sum over neighbor slots into the FC matmul's
    # K = M*HD reduction against the row-tiled fc weight.
    wb_all = jnp.dot(w_all, hbc_ref[...],
                     preferred_element_type=jnp.float32)           # (SEQ, M*HD)
    attn_v = wb_all * v_all

    ctx = jnp.dot(attn_v.astype(matmul_dtype), wfct_ref[...],
                  preferred_element_type=jnp.float32) + bfc        # fused fc + slot sum
    # dropout_fc with p=0 -> identity
    ctx = ctx + x                                                  # residual
    if not NORMALIZE_BEFORE:
        ctx = layer_norm(ctx)
    o_ref[...] = ctx


def pyramidal_attention(x, wqkv, wfct, vecs, valid_hd, hs_block, hbc_block,
                        head_tile, shifts, matmul_dtype):
    bsz, seq, d_model = x.shape
    x2 = x.reshape(bsz * seq, d_model)
    kernel = functools.partial(pam_kernel,
                               shifts=tuple(int(s) for s in shifts),
                               matmul_dtype=matmul_dtype)

    def rows(b):       # per-batch row block
        return (b, 0)

    def whole(b):      # full-array block (weights / constants, never re-fetched)
        return (0, 0)

    grid_spec = pltpu.PrefetchScalarGridSpec(
        num_scalar_prefetch=0,
        grid=(bsz,),   # one batch element per step; "parallel" -> both TCs on v7x
        in_specs=[
            pl.BlockSpec((seq, d_model), rows),
            pl.BlockSpec(wqkv.shape, whole),
            pl.BlockSpec(wfct.shape, whole),
            pl.BlockSpec(vecs.shape, whole),
            pl.BlockSpec((seq, valid_hd.shape[1]), rows),
            pl.BlockSpec(hs_block.shape, whole),
            pl.BlockSpec(hbc_block.shape, whole),
            pl.BlockSpec(head_tile.shape, whole),
        ],
        out_specs=pl.BlockSpec((seq, d_model), rows),
        scratch_shapes=[pltpu.VMEM((seq, M * HD), jnp.float32),   # packed q*k slots
                        pltpu.VMEM((seq, M * HD), jnp.float32)],  # packed v slots
    )
    # TODO(synk): at production sizes (B*S ~ 1e4+, d_model >= 512) switch to row-tiled
    # blocks (>=512 rows + WIN-row halo) with explicit vmem_limit_bytes so the working
    # set fits v7x's 64 MiB VMEM, and pad d_model to a multiple of 128 so the output
    # store is lane-dense (matters most on v5e's single vector-store slot).
    out2 = pl.pallas_call(
        kernel,
        out_shape=jax.ShapeDtypeStruct((bsz * seq, d_model), jnp.float32),
        grid_spec=grid_spec,
        compiler_params=pltpu.CompilerParams(dimension_semantics=("parallel",)),
    )(x2, wqkv, wfct, vecs, valid_hd, hs_block, hbc_block, head_tile)
    return out2.reshape(bsz, seq, d_model)


# --------------------------- pure-JAX reference (for checking) ----------------------
def ref_forward(x, wq, wk, wv, wfc, bfc, gamma, beta, q_k_mask):
    def layer_norm(t):
        mu = jnp.mean(t, axis=-1, keepdims=True)
        var = jnp.mean((t - mu) ** 2, axis=-1, keepdims=True)
        return (t - mu) * jax.lax.rsqrt(var + EPS) * gamma + beta

    residual = x
    q_in = layer_norm(x) if NORMALIZE_BEFORE else x
    q = (q_in @ wq) / math.sqrt(D_K)
    k = x @ wk
    v = x @ wv

    bsz, seq, _ = x.shape
    q = q.reshape(bsz, seq, N_HEAD, D_K)
    k = k.reshape(bsz, seq, N_HEAD, D_K)
    v = v.reshape(bsz, seq, N_HEAD, D_K)

    idx = jnp.maximum(q_k_mask, 0)                        # (seq, M)
    valid = (q_k_mask >= 0).astype(jnp.float32)           # (seq, M)
    kg = k[:, idx]                                        # (bsz, seq, M, H, DK)
    vg = v[:, idx]

    scores = jnp.einsum('bshd,bsmhd->bshm', q, kg) * valid[None, :, None, :]
    w = jax.nn.softmax(scores, axis=-1)                   # padding-0 semantics (not -inf)
    vg = vg * valid[None, :, :, None, None]
    out = jnp.einsum('bshm,bsmhd->bshd', w, vg)
    attn = out.reshape(bsz, seq, N_HEAD * D_K)

    ctx = attn @ wfc + bfc[0]
    ctx = ctx + residual
    if not NORMALIZE_BEFORE:
        ctx = layer_norm(ctx)
    return ctx


# ------------------------------------- main ----------------------------------------
def xavier_uniform(key, out_features, in_features):
    a = math.sqrt(6.0 / (in_features + out_features))
    w = jax.random.uniform(key, (out_features, in_features), jnp.float32, -a, a)
    return w.T  # store as (in, out) so the kernel does x @ W


if __name__ == "__main__":
    key = jax.random.PRNGKey(0)
    kx, kq, kk, kvw, kfc, kb = jax.random.split(key, 6)

    x = jax.random.normal(kx, (BSZ, SEQ, D_MODEL), jnp.float32)

    # parameters (deterministic, mirror the PyTorch __init__ shapes / inits)
    wq = xavier_uniform(kq, N_HEAD * D_K, D_MODEL)        # (D_MODEL, H*DK)
    wk = xavier_uniform(kk, N_HEAD * D_K, D_MODEL)
    wv = xavier_uniform(kvw, N_HEAD * D_K, D_MODEL)
    wfc = xavier_uniform(kfc, D_MODEL, N_HEAD * D_K)      # (H*DK, D_MODEL)
    bound = 1.0 / math.sqrt(N_HEAD * D_K)
    bfc = jax.random.uniform(kb, (1, D_MODEL), jnp.float32, -bound, bound)
    gamma = jnp.ones((1, D_MODEL), jnp.float32)           # nn.LayerNorm defaults
    beta = jnp.zeros((1, D_MODEL), jnp.float32)

    q_k_mask, k_q_mask = make_masks(SEQ, WIN)             # k_q_mask: backward-only, unused
    valid_hd = banded_valid_mask_lanes(q_k_mask, WIN, BSZ)           # (BSZ*SEQ, M*HD)
    hs_block, hbc_block, head_tile, wfct = build_structural_constants(wfc)

    # neighbor offsets -> per-sequence row shifts (roll direction resolved host-side)
    offsets = [j - WIN for j in range(M)]
    shifts = ([(-o) % SEQ for o in offsets] if roll_matches_jnp()
              else [o % SEQ for o in offsets])

    # fused QKV weight with the 1/sqrt(d_k) query scale folded in offline
    wqkv = jnp.concatenate([wq / math.sqrt(D_K), wk, wv], axis=1)
    vecs = jnp.concatenate([bfc, gamma, beta], axis=0)    # (3, D_MODEL) packed vectors

    ref = ref_forward(x, wq, wk, wv, wfc, bfc, gamma, beta, q_k_mask)

    # f32 matmul operands: tight check (only approximation = EUP approx reciprocal).
    out = pyramidal_attention(x, wqkv, wfct, vecs, valid_hd, hs_block, hbc_block,
                              head_tile, shifts, jnp.float32)
    out = jax.block_until_ready(out)
    assert out.shape == (BSZ, SEQ, D_MODEL)
    assert jnp.allclose(out, ref, atol=5e-3, rtol=5e-3), (
        f"f32 max abs err {jnp.max(jnp.abs(out - ref))}")

    # bf16 matmul operands (v6e/v7x MXU-rate path; elementwise/softmax/LN stay f32).
    out_bf16 = pyramidal_attention(x, wqkv.astype(jnp.bfloat16),
                                   wfct.astype(jnp.bfloat16), vecs, valid_hd,
                                   hs_block, hbc_block, head_tile, shifts,
                                   jnp.bfloat16)
    out_bf16 = jax.block_until_ready(out_bf16)
    assert jnp.allclose(out_bf16, ref, atol=1e-1, rtol=1e-1), (
        f"bf16 max abs err {jnp.max(jnp.abs(out_bf16 - ref))}")

    print("KERNEL_OK")
</pallas_src>

<mosaic_0001>
module attributes {stable_mosaic.version = 11 : i64} {
  func.func @pam_kernel(%arg0: i32, %arg1: memref<8x32xf32, #tpu.memory_space<vmem>>, %arg2: memref<32x96xf32, #tpu.memory_space<vmem>>, %arg3: memref<160x32xf32, #tpu.memory_space<vmem>>, %arg4: memref<3x32xf32, #tpu.memory_space<vmem>>, %arg5: memref<8x160xf32, #tpu.memory_space<vmem>>, %arg6: memref<160x20xf32, #tpu.memory_space<vmem>>, %arg7: memref<20x160xf32, #tpu.memory_space<vmem>>, %arg8: memref<4x20xf32, #tpu.memory_space<vmem>>, %arg9: memref<8x32xf32, #tpu.memory_space<vmem>>, %arg10: memref<8x160xf32, #tpu.memory_space<vmem>>, %arg11: memref<8x160xf32, #tpu.memory_space<vmem>>) attributes {dimension_semantics = [#tpu.dimension_semantics<parallel>], iteration_bounds = array<i64: 2>, scalar_prefetch = 0 : i64, scratch_operands = 2 : i64, tpu.core_type = #tpu.core_type<tc>, window_params = [{transform_indices = @transform_0, window_bounds = array<i64: 8, 32>}, {pipeline_mode = #tpu.pipeline_mode<synchronous>, transform_indices = @transform_1, window_bounds = array<i64: 32, 96>}, {pipeline_mode = #tpu.pipeline_mode<synchronous>, transform_indices = @transform_2, window_bounds = array<i64: 160, 32>}, {pipeline_mode = #tpu.pipeline_mode<synchronous>, transform_indices = @transform_3, window_bounds = array<i64: 3, 32>}, {transform_indices = @transform_4, window_bounds = array<i64: 8, 160>}, {pipeline_mode = #tpu.pipeline_mode<synchronous>, transform_indices = @transform_5, window_bounds = array<i64: 160, 20>}, {pipeline_mode = #tpu.pipeline_mode<synchronous>, transform_indices = @transform_6, window_bounds = array<i64: 20, 160>}, {pipeline_mode = #tpu.pipeline_mode<synchronous>, transform_indices = @transform_7, window_bounds = array<i64: 4, 20>}, {transform_indices = @transform_8, window_bounds = array<i64: 8, 32>}]} {
    %c0 = arith.constant 0 : index
    %c0_0 = arith.constant 0 : index
    %0 = vector.load %arg1[%c0, %c0_0] : memref<8x32xf32, #tpu.memory_space<vmem>>, vector<8x32xf32>
    %c0_1 = arith.constant 0 : index
    %c0_2 = arith.constant 0 : index
    %1 = vector.load %arg4[%c0_1, %c0_2] : memref<3x32xf32, #tpu.memory_space<vmem>>, vector<3x32xf32>
    %2 = vector.extract_strided_slice %1 {offsets = [0, 0], sizes = [1, 32], strides = [1, 1]} : vector<3x32xf32> to vector<1x32xf32>
    %3 = vector.extract_strided_slice %1 {offsets = [1, 0], sizes = [1, 32], strides = [1, 1]} : vector<3x32xf32> to vector<1x32xf32>
    %4 = vector.extract_strided_slice %1 {offsets = [2, 0], sizes = [1, 32], strides = [1, 1]} : vector<3x32xf32> to vector<1x32xf32>
    %c0_3 = arith.constant 0 : index
    %c0_4 = arith.constant 0 : index
    %5 = vector.load %arg2[%c0_3, %c0_4] : memref<32x96xf32, #tpu.memory_space<vmem>>, vector<32x96xf32>
    %cst = arith.constant dense<0.000000e+00> : vector<8x96xf32>
    %6 = tpu.matmul %0, %5, %cst {dimension_numbers = #tpu.dot_dimension_numbers<[1], [0], [0], [1], [0, 0, 1, 1], [], []>} : vector<8x32xf32>, vector<32x96xf32>, vector<8x96xf32> -> vector<8x96xf32>
    %7 = vector.extract_strided_slice %6 {offsets = [0, 0], sizes = [8, 32], strides = [1, 1]} : vector<8x96xf32> to vector<8x32xf32>
    %8 = vector.extract_strided_slice %6 {offsets = [0, 32], sizes = [8, 64], strides = [1, 1]} : vector<8x96xf32> to vector<8x64xf32>
    %c2_i32 = arith.constant 2 : i32
    %9 = tpu.dynamic_rotate %8 by %c2_i32 dim 0 : vector<8x64xf32>, i32 -> vector<8x64xf32>
    %10 = vector.extract_strided_slice %9 {offsets = [0, 0], sizes = [8, 32], strides = [1, 1]} : vector<8x64xf32> to vector<8x32xf32>
    %11 = arith.mulf %7, %10 : vector<8x32xf32>
    %c0_5 = arith.constant 0 : index
    %c0_6 = arith.constant 0 : index
    %12 = vector.load %arg10[%c0_5, %c0_6] : memref<8x160xf32, #tpu.memory_space<vmem>>, vector<8x32xf32>
    tpu.vector_store %arg10[%c0_5, %c0_6], %11 {strides = array<i32>} : memref<8x160xf32, #tpu.memory_space<vmem>>, vector<8x32xf32>,
    %13 = vector.extract_strided_slice %9 {offsets = [0, 32], sizes = [8, 32], strides = [1, 1]} : vector<8x64xf32> to vector<8x32xf32>
    %c0_7 = arith.constant 0 : index
    %c0_8 = arith.constant 0 : index
    %14 = vector.load %arg11[%c0_7, %c0_8] : memref<8x160xf32, #tpu.memory_space<vmem>>, vector<8x32xf32>
    tpu.vector_store %arg11[%c0_7, %c0_8], %13 {strides = array<i32>} : memref<8x160xf32, #tpu.memory_space<vmem>>, vector<8x32xf32>,
    %c1_i32 = arith.constant 1 : i32
    %15 = tpu.dynamic_rotate %8 by %c1_i32 dim 0 : vector<8x64xf32>, i32 -> vector<8x64xf32>
    %16 = vector.extract_strided_slice %15 {offsets = [0, 0], sizes = [8, 32], strides = [1, 1]} : vector<8x64xf32> to vector<8x32xf32>
    %17 = arith.mulf %7, %16 : vector<8x32xf32>
    %c0_9 = arith.constant 0 : index
    %c32 = arith.constant 32 : index
    %18 = vector.load %arg10[%c0_9, %c32] : memref<8x160xf32, #tpu.memory_space<vmem>>, vector<8x32xf32>
    tpu.vector_store %arg10[%c0_9, %c32], %17 {strides = array<i32>} : memref<8x160xf32, #tpu.memory_space<vmem>>, vector<8x32xf32>,
    %19 = vector.extract_strided_slice %15 {offsets = [0, 32], sizes = [8, 32], strides = [1, 1]} : vector<8x64xf32> to vector<8x32xf32>
    %c0_10 = arith.constant 0 : index
    %c32_11 = arith.constant 32 : index
    %20 = vector.load %arg11[%c0_10, %c32_11] : memref<8x160xf32, #tpu.memory_space<vmem>>, vector<8x32xf32>
    tpu.vector_store %arg11[%c0_10, %c32_11], %19 {strides = array<i32>} : memref<8x160xf32, #tpu.memory_space<vmem>>, vector<8x32xf32>,
    %21 = vector.extract_strided_slice %8 {offsets = [0, 0], sizes = [8, 32], strides = [1, 1]} : vector<8x64xf32> to vector<8x32xf32>
    %22 = arith.mulf %7, %21 : vector<8x32xf32>
    %c0_12 = arith.constant 0 : index
    %c64 = arith.constant 64 : index
    %23 = vector.load %arg10[%c0_12, %c64] : memref<8x160xf32, #tpu.memory_space<vmem>>, vector<8x32xf32>
    tpu.vector_store %arg10[%c0_12, %c64], %22 {strides = array<i32>} : memref<8x160xf32, #tpu.memory_space<vmem>>, vector<8x32xf32>,
    %24 = vector.extract_strided_slice %8 {offsets = [0, 32], sizes = [8, 32], strides = [1, 1]} : vector<8x64xf32> to vector<8x32xf32>
    %c0_13 = arith.constant 0 : index
    %c64_14 = arith.constant 64 : index
    %25 = vector.load %arg11[%c0_13, %c64_14] : memref<8x160xf32, #tpu.memory_space<vmem>>, vector<8x32xf32>
    tpu.vector_store %arg11[%c0_13, %c64_14], %24 {strides = array<i32>} : memref<8x160xf32, #tpu.memory_space<vmem>>, vector<8x32xf32>,
    %c7_i32 = arith.constant 7 : i32
    %26 = tpu.dynamic_rotate %8 by %c7_i32 dim 0 : vector<8x64xf32>, i32 -> vector<8x64xf32>
    %27 = vector.extract_strided_slice %26 {offsets = [0, 0], sizes = [8, 32], strides = [1, 1]} : vector<8x64xf32> to vector<8x32xf32>
    %28 = arith.mulf %7, %27 : vector<8x32xf32>
    %c0_15 = arith.constant 0 : index
    %c96 = arith.constant 96 : index
    %29 = vector.load %arg10[%c0_15, %c96] : memref<8x160xf32, #tpu.memory_space<vmem>>, vector<8x32xf32>
    tpu.vector_store %arg10[%c0_15, %c96], %28 {strides = array<i32>} : memref<8x160xf32, #tpu.memory_space<vmem>>, vector<8x32xf32>,
    %30 = vector.extract_strided_slice %26 {offsets = [0, 32], sizes = [8, 32], strides = [1, 1]} : vector<8x64xf32> to vector<8x32xf32>
    %c0_16 = arith.constant 0 : index
    %c96_17 = arith.constant 96 : index
    %31 = vector.load %arg11[%c0_16, %c96_17] : memref<8x160xf32, #tpu.memory_space<vmem>>, vector<8x32xf32>
    tpu.vector_store %arg11[%c0_16, %c96_17], %30 {strides = array<i32>} : memref<8x160xf32, #tpu.memory_space<vmem>>, vector<8x32xf32>,
    %c6_i32 = arith.constant 6 : i32
    %32 = tpu.dynamic_rotate %8 by %c6_i32 dim 0 : vector<8x64xf32>, i32 -> vector<8x64xf32>
    %33 = vector.extract_strided_slice %32 {offsets = [0, 0], sizes = [8, 32], strides = [1, 1]} : vector<8x64xf32> to vector<8x32xf32>
    %34 = arith.mulf %7, %33 : vector<8x32xf32>
    %c0_18 = arith.constant 0 : index
    %c128 = arith.constant 128 : index
    %35 = vector.load %arg10[%c0_18, %c128] : memref<8x160xf32, #tpu.memory_space<vmem>>, vector<8x32xf32>
    tpu.vector_store %arg10[%c0_18, %c128], %34 {strides = array<i32>} : memref<8x160xf32, #tpu.memory_space<vmem>>, vector<8x32xf32>,
    %36 = vector.extract_strided_slice %32 {offsets = [0, 32], sizes = [8, 32], strides = [1, 1]} : vector<8x64xf32> to vector<8x32xf32>
    %c0_19 = arith.constant 0 : index
    %c128_20 = arith.constant 128 : index
    %37 = vector.load %arg11[%c0_19, %c128_20] : memref<8x160xf32, #tpu.memory_space<vmem>>, vector<8x32xf32>
    tpu.vector_store %arg11[%c0_19, %c128_20], %36 {strides = array<i32>} : memref<8x160xf32, #tpu.memory_space<vmem>>, vector<8x32xf32>,
    %c0_21 = arith.constant 0 : index
    %c0_22 = arith.constant 0 : index
    %38 = vector.load %arg5[%c0_21, %c0_22] : memref<8x160xf32, #tpu.memory_space<vmem>>, vector<8x160xf32>
    %c0_23 = arith.constant 0 : index
    %c0_24 = arith.constant 0 : index
    %39 = vector.load %arg10[%c0_23, %c0_24] : memref<8x160xf32, #tpu.memory_space<vmem>>, vector<8x160xf32>
    %40 = arith.mulf %39, %38 : vector<8x160xf32>
    %c0_25 = arith.constant 0 : index
    %c0_26 = arith.constant 0 : index
    %41 = vector.load %arg11[%c0_25, %c0_26] : memref<8x160xf32, #tpu.memory_space<vmem>>, vector<8x160xf32>
    %42 = arith.mulf %41, %38 : vector<8x160xf32>
    %c0_27 = arith.constant 0 : index
    %c0_28 = arith.constant 0 : index
    %43 = vector.load %arg6[%c0_27, %c0_28] : memref<160x20xf32, #tpu.memory_space<vmem>>, vector<160x20xf32>
    %cst_29 = arith.constant dense<0.000000e+00> : vector<8x20xf32>
    %44 = tpu.matmul %40, %43, %cst_29 {dimension_numbers = #tpu.dot_dimension_numbers<[1], [0], [0], [1], [0, 0, 1, 1], [], []>} : vector<8x160xf32>, vector<160x20xf32>, vector<8x20xf32> -> vector<8x20xf32>
    %45 = vector.extract_strided_slice %44 {offsets = [0, 0], sizes = [8, 4], strides = [1, 1]} : vector<8x20xf32> to vector<8x4xf32>
    %46 = vector.extract_strided_slice %44 {offsets = [0, 4], sizes = [8, 4], strides = [1, 1]} : vector<8x20xf32> to vector<8x4xf32>
    %47 = arith.maximumf %45, %46 : vector<8x4xf32>
    %48 = vector.extract_strided_slice %44 {offsets = [0, 8], sizes = [8, 4], strides = [1, 1]} : vector<8x20xf32> to vector<8x4xf32>
    %49 = arith.maximumf %47, %48 : vector<8x4xf32>
    %50 = vector.extract_strided_slice %44 {offsets = [0, 12], sizes = [8, 4], strides = [1, 1]} : vector<8x20xf32> to vector<8x4xf32>
    %51 = arith.maximumf %49, %50 : vector<8x4xf32>
    %52 = vector.extract_strided_slice %44 {offsets = [0, 16], sizes = [8, 4], strides = [1, 1]} : vector<8x20xf32> to vector<8x4xf32>
    %53 = arith.maximumf %51, %52 : vector<8x4xf32>
    %c0_30 = arith.constant 0 : index
    %c0_31 = arith.constant 0 : index
    %54 = vector.load %arg8[%c0_30, %c0_31] : memref<4x20xf32, #tpu.memory_space<vmem>>, vector<4x20xf32>
    %cst_32 = arith.constant dense<0.000000e+00> : vector<8x20xf32>
    %55 = tpu.matmul %53, %54, %cst_32 {dimension_numbers = #tpu.dot_dimension_numbers<[1], [0], [0], [1], [0, 0, 1, 1], [], []>} : vector<8x4xf32>, vector<4x20xf32>, vector<8x20xf32> -> vector<8x20xf32>
    %56 = arith.subf %44, %55 : vector<8x20xf32>
    %57 = math.exp %56 : vector<8x20xf32>
    %58 = vector.extract_strided_slice %57 {offsets = [0, 0], sizes = [8, 4], strides = [1, 1]} : vector<8x20xf32> to vector<8x4xf32>
    %59 = vector.extract_strided_slice %57 {offsets = [0, 4], sizes = [8, 4], strides = [1, 1]} : vector<8x20xf32> to vector<8x4xf32>
    %60 = arith.addf %58, %59 : vector<8x4xf32>
    %61 = vector.extract_strided_slice %57 {offsets = [0, 8], sizes = [8, 4], strides = [1, 1]} : vector<8x20xf32> to vector<8x4xf32>
    %62 = arith.addf %60, %61 : vector<8x4xf32>
    %63 = vector.extract_strided_slice %57 {offsets = [0, 12], sizes = [8, 4], strides = [1, 1]} : vector<8x20xf32> to vector<8x4xf32>
    %64 = arith.addf %62, %63 : vector<8x4xf32>
    %65 = vector.extract_strided_slice %57 {offsets = [0, 16], sizes = [8, 4], strides = [1, 1]} : vector<8x20xf32> to vector<8x4xf32>
    %66 = arith.addf %64, %65 : vector<8x4xf32>
    %67 = tpu.reciprocal %66 {approx = true} : vector<8x4xf32> -> vector<8x4xf32>
    %c0_33 = arith.constant 0 : index
    %c0_34 = arith.constant 0 : index
    %68 = vector.load %arg8[%c0_33, %c0_34] : memref<4x20xf32, #tpu.memory_space<vmem>>, vector<4x20xf32>
    %cst_35 = arith.constant dense<0.000000e+00> : vector<8x20xf32>
    %69 = tpu.matmul %67, %68, %cst_35 {dimension_numbers = #tpu.dot_dimension_numbers<[1], [0], [0], [1], [0, 0, 1, 1], [], []>} : vector<8x4xf32>, vector<4x20xf32>, vector<8x20xf32> -> vector<8x20xf32>
    %70 = arith.mulf %57, %69 : vector<8x20xf32>
    %c0_36 = arith.constant 0 : index
    %c0_37 = arith.constant 0 : index
    %71 = vector.load %arg7[%c0_36, %c0_37] : memref<20x160xf32, #tpu.memory_space<vmem>>, vector<20x160xf32>
    %cst_38 = arith.constant dense<0.000000e+00> : vector<8x160xf32>
    %72 = tpu.matmul %70, %71, %cst_38 {dimension_numbers = #tpu.dot_dimension_numbers<[1], [0], [0], [1], [0, 0, 1, 1], [], []>} : vector<8x20xf32>, vector<20x160xf32>, vector<8x160xf32> -> vector<8x160xf32>
    %73 = arith.mulf %72, %42 : vector<8x160xf32>
    %c0_39 = arith.constant 0 : index
    %c0_40 = arith.constant 0 : index
    %74 = vector.load %arg3[%c0_39, %c0_40] : memref<160x32xf32, #tpu.memory_space<vmem>>, vector<160x32xf32>
    %cst_41 = arith.constant dense<0.000000e+00> : vector<8x32xf32>
    %75 = tpu.matmul %73, %74, %cst_41 {dimension_numbers = #tpu.dot_dimension_numbers<[1], [0], [0], [1], [0, 0, 1, 1], [], []>} : vector<8x160xf32>, vector<160x32xf32>, vector<8x32xf32> -> vector<8x32xf32>
    %76 = vector.broadcast %2 : vector<1x32xf32> to vector<8x32xf32>
    %77 = arith.addf %75, %76 : vector<8x32xf32>
    %78 = arith.addf %77, %0 : vector<8x32xf32>
    %cst_42 = arith.constant dense<0.000000e+00> : vector<8xf32>
    %79 = vector.multi_reduction <add>, %78, %cst_42 [1] : vector<8x32xf32> to vector<8xf32>
    %80 = vector.shape_cast %79 : vector<8xf32> to vector<8x1xf32>
    %cst_43 = arith.constant 3.200000e+01 : f32
    %81 = vector.broadcast %cst_43 : f32 to vector<8x1xf32>
    %82 = arith.divf %80, %81 : vector<8x1xf32>
    %83 = vector.broadcast %82 : vector<8x1xf32> to vector<8x32xf32>
    %84 = arith.subf %78, %83 : vector<8x32xf32>
    %85 = arith.mulf %84, %84 : vector<8x32xf32>
    %cst_44 = arith.constant dense<0.000000e+00> : vector<8xf32>
    %86 = vector.multi_reduction <add>, %85, %cst_44 [1] : vector<8x32xf32> to vector<8xf32>
    %87 = vector.shape_cast %86 : vector<8xf32> to vector<8x1xf32>
    %cst_45 = arith.constant 3.200000e+01 : f32
    %88 = vector.broadcast %cst_45 : f32 to vector<8x1xf32>
    %89 = arith.divf %87, %88 : vector<8x1xf32>
    %90 = vector.broadcast %82 : vector<8x1xf32> to vector<8x32xf32>
    %91 = arith.subf %78, %90 : vector<8x32xf32>
    %cst_46 = arith.constant 9.99999997E-7 : f32
    %92 = vector.broadcast %cst_46 : f32 to vector<8x1xf32>
    %93 = arith.addf %89, %92 : vector<8x1xf32>
    %94 = math.rsqrt %93 : vector<8x1xf32>
    %95 = vector.broadcast %94 : vector<8x1xf32> to vector<8x32xf32>
    %96 = arith.mulf %91, %95 : vector<8x32xf32>
    %97 = vector.broadcast %3 : vector<1x32xf32> to vector<8x32xf32>
    %98 = arith.mulf %96, %97 : vector<8x32xf32>
    %99 = vector.broadcast %4 : vector<1x32xf32> to vector<8x32xf32>
    %100 = arith.addf %98, %99 : vector<8x32xf32>
    %c0_47 = arith.constant 0 : index
    %c0_48 = arith.constant 0 : index
    %101 = vector.load %arg9[%c0_47, %c0_48] : memref<8x32xf32, #tpu.memory_space<vmem>>, vector<8x32xf32>
    tpu.vector_store %arg9[%c0_47, %c0_48], %100 {strides = array<i32>} : memref<8x32xf32, #tpu.memory_space<vmem>>, vector<8x32xf32>,
    return
  }
  func.func @transform_0(%arg0: i32) -> (i32, i32) {
    %c0_i32 = arith.constant 0 : i32
    %c0_i32_0 = arith.constant 0 : i32
    return %arg0, %c0_i32 : i32, i32
  }
  func.func @transform_1(%arg0: i32) -> (i32, i32) {
    %c0_i32 = arith.constant 0 : i32
    %c0_i32_0 = arith.constant 0 : i32
    %c0_i32_1 = arith.constant 0 : i32
    return %c0_i32, %c0_i32_0 : i32, i32
  }
  func.func @transform_2(%arg0: i32) -> (i32, i32) {
    %c0_i32 = arith.constant 0 : i32
    %c0_i32_0 = arith.constant 0 : i32
    %c0_i32_1 = arith.constant 0 : i32
    return %c0_i32, %c0_i32_0 : i32, i32
  }
  func.func @transform_3(%arg0: i32) -> (i32, i32) {
    %c0_i32 = arith.constant 0 : i32
    %c0_i32_0 = arith.constant 0 : i32
    %c0_i32_1 = arith.constant 0 : i32
    return %c0_i32, %c0_i32_0 : i32, i32
  }
  func.func @transform_4(%arg0: i32) -> (i32, i32) {
    %c0_i32 = arith.constant 0 : i32
    %c0_i32_0 = arith.constant 0 : i32
    return %arg0, %c0_i32 : i32, i32
  }
  func.func @transform_5(%arg0: i32) -> (i32, i32) {
    %c0_i32 = arith.constant 0 : i32
    %c0_i32_0 = arith.constant 0 : i32
    %c0_i32_1 = arith.constant 0 : i32
    return %c0_i32, %c0_i32_0 : i32, i32
  }
  func.func @transform_6(%arg0: i32) -> (i32, i32) {
    %c0_i32 = arith.constant 0 : i32
    %c0_i32_0 = arith.constant 0 : i32
    %c0_i32_1 = arith.constant 0 : i32
    return %c0_i32, %c0_i32_0 : i32, i32
  }
  func.func @transform_7(%arg0: i32) -> (i32, i32) {
    %c0_i32 = arith.constant 0 : i32
    %c0_i32_0 = arith.constant 0 : i32
    %c0_i32_1 = arith.constant 0 : i32
    return %c0_i32, %c0_i32_0 : i32, i32
  }
  func.func @transform_8(%arg0: i32) -> (i32, i32) {
    %c0_i32 = arith.constant 0 : i32
    %c0_i32_0 = arith.constant 0 : i32
    return %arg0, %c0_i32 : i32, i32
  }
}

</mosaic_0001>

<bundles_post_ra>
// kernel: tpu_custom_call.1
= control target key start
LH: loop header
LB: loop body
LE: loop exit
PB: predicated region body
PF: predicated region fallthrough
CT: control target
= control target key end

     0   :  { %13 = vsyncpa [#allocation5], 0  ;;  %s1706_s0 = inlined_call_operand.vmem [shape: f32[16,32], index: 0, kind: input, shape index: {}]   ;;  %s1707_s1 = inlined_call_operand.vmem [shape: f32[32,96], index: 1, kind: input, shape index: {}]   ;;  %s1708_s2 = inlined_call_operand.vmem [shape: f32[160,32], index: 2, kind: input, shape index: {}]   ;;  %s1709_s3 = inlined_call_operand.vmem [shape: f32[3,32], index: 3, kind: input, shape index: {}]   ;;  %s1710_s4 = inlined_call_operand.vmem [shape: f32[16,160], index: 4, kind: input, shape index: {}]   ;;  %s1711_s5 = inlined_call_operand.vmem [shape: f32[160,20], index: 5, kind: input, shape index: {}]   ;;  %s1712_s6 = inlined_call_operand.vmem [shape: f32[20,160], index: 6, kind: input, shape index: {}]   ;;  %s1713_s7 = inlined_call_operand.vmem [shape: f32[4,20], index: 7, kind: input, shape index: {}]   ;;  %s1714_s8 = inlined_call_operand.hbm [shape: f32[16,32], index: 8, kind: output, shape index: {}]  }
   0x1   :  { %15 = vsyncpa [#allocation5 + $0x1], 0  ;;  %s1340_s27 = smov 0   ;;  %s1342_s28 = smov 0  }
   0x2   :  { %s1344_s29 = smov 0   ;;  %s1346_s30 = smov 0  }
   0x3 LB: > { %s1361_s9 = sadd.s32 4294967295, %s1282_s30   ;;  %s1042_s10 = sadd.s32 4294967294, %s1282_s30   ;;  %s1282_s30 = sphi %s1346_s30, %s1720_s30   ;;  %s1278_s29 = sphi %s1344_s29, %s1719_s29   ;;  %s1274_s28 = sphi %s1342_s28, %s1718_s28   ;;  %s1270_s27 = sphi %s1340_s27, %s1717_s27  }
   0x4   : > { %s1365_s11 = sadd.s32 1, %s1282_s30   ;;  %s206_s12 = sadd.s32 1, %s1278_s29 }
   0x5   : > { %s203_s13 = ssub.s32 %s1282_s30, %s1365_s11  ;;  %p216_p0 = scmp.ne.s32.totalorder %s1278_s29, %s1274_s28 }
   0x6   : > { %p204_p1 = scmp.eq.s32.totalorder %s203_s13, 0  ;;  %p217_p2 = scmp.eq.s32.totalorder %s1361_s9, 1 }
   0x7   : > { %p222_p3 = scmp.ne.s32.totalorder %s1274_s28, %s1270_s27  ;;  %p223_p4 = scmp.eq.s32.totalorder %s1042_s10, 1 }
   0x8   : > { %s1376_s14 = scalar_select %p204_p1, %s1278_s29, %s206_s12  }
   0x9   : > { %p1378_p5 = por %p217_p2, %p216_p0  ;;  %p1382_p6 = por %p223_p4, %p222_p3 }
   0xa   : > { %p1045_p7 = scmp.ge.s32.totalorder %s1282_s30, 1  ;;  %p274_p8 = scmp.lt.s32.totalorder %s1282_s30, 3 }
   0xc   : > { %p275_p9 = pnand %p1045_p7, %p274_p8 }
   0xd   : > { %v323_v0 = vld [vmem:[%s1707_s1] sm:$0xff] (!%p275_p9)  ;;  %v324_v1 = vld [vmem:[%s1707_s1 + $0x8] sm:$0xff] (!%p275_p9)  ;;  %v325_v2 = vld [vmem:[%s1707_s1 + $0x10] sm:$0xff] (!%p275_p9)  ;;  %v1284_v3 = vmov (!%p275_p9), 0.0|0.0   ;;  %vm1285_vm0 = vmmov (!%p275_p9), 0   ;;  %v1286_v6 = vmov (!%p275_p9), 0.0  }
   0xe   : > { %278 = sbr.rel (%p275_p9) target bundleno = 2153 (0x869), region = 52  ;;  %1095 = vmatprep.subr.bf16.mxu1 (!%p275_p9), %v1284_v3  ;;  %v1096_v4 = vpack.c.bf16 (!%p275_p9), %v324_v1, %v323_v0  ;;  %v326_v5 = vld [vmem:[%s1707_s1 + $0x18] sm:$0xff] (!%p275_p9)  ;;  %1082 = vmatprep.mubr.msk.f32.mxu1 (!%p275_p9), %vm1285_vm0, %v1286_v6  ;;  %p312_p10 = scmp.lt.s32.totalorder (!%p275_p9), %s1361_s9, 1  ;;  %vm327_vm1 = vcmask (!%p275_p9), 261120   ;;  %v461_v11 = vld [vmem:[%s1711_s5] sm:$0xff] (!%p275_p9)  ;;  %v462_v12 = vld [vmem:[%s1711_s5 + $0x8] sm:$0xff] (!%p275_p9) }
   0xf   : > { %1085 = vmatprep.subr.mxu0 (!%p275_p9), %v1286_v6  ;;  %1087 = vmatprep.mubr.msk.f32.mxu0 (!%p275_p9), %vm1285_vm0, %v1286_v6  ;;  %v1099_v7 = vpack.c.bf16 (!%p275_p9), %v326_v5, %v325_v2  ;;  %s1287_s17 = smov (!%p275_p9), 96   ;;  %v463_v13 = vld [vmem:[%s1711_s5 + $0x10] sm:$0xff] (!%p275_p9)  ;;  %v1102_v14 = vpack.c.bf16 (!%p275_p9), %v462_v12, %v461_v11  ;;  %v464_v15 = vld [vmem:[%s1711_s5 + $0x18] sm:$0xff] (!%p275_p9)  ;;  %v465_v17 = vld [vmem:[%s1711_s5 + $0x20] sm:$0xff] (!%p275_p9)  ;;  %s1289_s12 = smov (!%p275_p9), 32   ;;  %vm419_vm2 = vcmask (!%p275_p9), 523520  }
  0x10   : > { %1097 = vmatpush3.bf16.msra.mxu1 (!%p275_p9), %v1096_v4  ;;  %v1105_v16 = vpack.c.bf16 (!%p275_p9), %v464_v15, %v463_v13  ;;  %v466_v18 = vld [vmem:[%s1711_s5 + $0x28] sm:$0xff] (!%p275_p9)  ;;  %v467_v20 = vld [vmem:[%s1711_s5 + $0x30] sm:$0xff] (!%p275_p9)  ;;  %v468_v21 = vld [vmem:[%s1711_s5 + $0x38] sm:$0xff] (!%p275_p9)  ;;  %vm427_vm3 = vcmask (!%p275_p9), 785920   ;;  %vm436_vm4 = vcmask (!%p275_p9), 1048320   ;;  %vm576_vm5 = vcmask (!%p275_p9), 1043456  }
  0x11   : > { %1098 = vmatprep.subr.bf16.mxu1 (!%p275_p9), %v1284_v3  ;;  %v1108_v19 = vpack.c.bf16 (!%p275_p9), %v466_v18, %v465_v17  ;;  %v1111_v22 = vpack.c.bf16 (!%p275_p9), %v468_v21, %v467_v20  ;;  %v469_v23 = vld [vmem:[%s1711_s5 + $0x40] sm:$0xff] (!%p275_p9)  ;;  %v470_v24 = vld [vmem:[%s1711_s5 + $0x48] sm:$0xff] (!%p275_p9)  ;;  %v471_v26 = vld [vmem:[%s1711_s5 + $0x50] sm:$0xff] (!%p275_p9)  ;;  %s1290_s21 = smov (!%p275_p9), 120   ;;  %s1291_s22 = smov (!%p275_p9), 124   ;;  %vm572_vm6 = vcmask (!%p275_p9), 31744  }
  0x12   : > { %v1114_v25 = vpack.c.bf16 (!%p275_p9), %v470_v24, %v469_v23  ;;  %v472_v27 = vld [vmem:[%s1711_s5 + $0x58] sm:$0xff] (!%p275_p9)  ;;  %v473_v29 = vld [vmem:[%s1711_s5 + $0x60] sm:$0xff] (!%p275_p9)  ;;  %v474_v30 = vld [vmem:[%s1711_s5 + $0x68] sm:$0xff] (!%p275_p9)  ;;  %s1292_s23 = smov (!%p275_p9), 112   ;;  %s1293_s24 = smov (!%p275_p9), 116   ;;  %vm751_vm7 = vcmask (!%p275_p9), 162816  }
  0x13   : > { %v1117_v28 = vpack.c.bf16 (!%p275_p9), %v472_v27, %v471_v26  ;;  %v1120_v31 = vpack.c.bf16 (!%p275_p9), %v474_v30, %v473_v29  ;;  %v475_v32 = vld [vmem:[%s1711_s5 + $0x70] sm:$0xff] (!%p275_p9)  ;;  %v476_v33 = vld [vmem:[%s1711_s5 + $0x78] sm:$0xff] (!%p275_p9)  ;;  %v477_v35 = vld [vmem:[%s1711_s5 + $0x80] sm:$0xff] (!%p275_p9) }
  0x14   : > { %1100 = vmatpush3.bf16.msra.mxu1 (!%p275_p9), %v1099_v7  ;;  %v1123_v34 = vpack.c.bf16 (!%p275_p9), %v476_v33, %v475_v32  ;;  %v478_v36 = vld [vmem:[%s1711_s5 + $0x88] sm:$0xff] (!%p275_p9)  ;;  %v479_v38 = vld [vmem:[%s1711_s5 + $0x90] sm:$0xff] (!%p275_p9)  ;;  %v480_v39 = vld [vmem:[%s1711_s5 + $0x98] sm:$0xff] (!%p275_p9) }
  0x15   : > { %s1408_s25 = scalar_select %p312_p10, %s1361_s9, 1  ;;  %1101 = vmatprep.subr.bf16.mxu1 %v1284_v3  ;;  %v1126_v37 = vpack.c.bf16 %v478_v36, %v477_v35  ;;  %v1129_v40 = vpack.c.bf16 %v480_v39, %v479_v38  ;;  %v571_v60 = vld [vmem:[%s1713_s7] sm:$0xf]  ;;  %v748_v17 = vld [vmem:[%s1712_s6 + $0x18] sm:$0xff] }
  0x16   : > { %1086 = vmatpush3.msk.msra.mxu0 %vm576_vm5, %v571_v60  ;;  %v745_v30 = vld [vmem:[%s1712_s6] sm:$0xff] }
  0x17   : > { %s1047_s26 = sshll.u32 %s1408_s25, 3  ;;  %s1064_s10 = sshll.u32 %s1408_s25, 4  ;;  %1090 = vmatprep.subr.mxu0 %v1286_v6  ;;  %v834_v35 = vld [vmem:[%s1708_s2] sm:$0xff] }
  0x18   : > { %s315_s13 = scalar_lea.vmem %s1706_s0, %s1047_s26  ;;  %s1288_s26 = smov 64  }
  0x19   : > { %v1415_v8 = vld [vmem:[%s315_s13] sm:$0xff]  ;;  %s320_s19 = scalar_lea.vmem %s1710_s4, %s1064_s10  ;;  %s309_s13 = sand.u32 1, %s1274_s28  }
  0x1a   : > { %1083 = vmatmul.mubr.msk.f32.vlgmr.msra.gmra.mrb[0].mxu1 %vm327_vm1, %v1415_v8  ;;  %v1521_v51 = vld [vmem:[%s320_s19 + $0x8] sm:$0xff]  ;;  %v1528_v57 = vld [vmem:[%s320_s19] sm:$0xff]  ;;  %s1046_s18 = sshll.u32 %s309_s13, 3 }
  0x1b   : > { %1103 = vmatpush1.bf16.msra.mxu1 %v1102_v14 }
  0x1c   : > { %1104 = vmatprep.subr.bf16.mxu1 %v1284_v3 }
  0x1f   : > { %1106 = vmatpush1.bf16.msra.mxu1 %v1105_v16  ;;  %v746_v16 = vld [vmem:[%s1712_s6 + $0x8] sm:$0xff] }
  0x20   : > { %1107 = vmatprep.subr.bf16.mxu1 %v1284_v3  ;;  %v1131_v18 = vpack.c.bf16 %v748_v17, %v746_v16  ;;  %v854_v16 = vlaneseq }
  0x22   : > { %v855_v17 = vshrl.u32 %v854_v16, 7 }
  0x23   : > { %1109 = vmatpush1.bf16.msra.mxu1 %v1108_v19 }
  0x24   : > { %1110 = vmatprep.subr.bf16.mxu1 %v1284_v3 }
  0x27   : > { %1112 = vmatpush1.bf16.msra.mxu1 %v1111_v22 }
  0x28   : > { %1113 = vmatprep.subr.bf16.mxu1 %v1284_v3 }
  0x2b   : > { %1115 = vmatpush1.bf16.msra.mxu1 %v1114_v25 }
  0x2c   : > { %1116 = vmatprep.subr.bf16.mxu1 %v1284_v3 }
  0x2f   : > { %1118 = vmatpush1.bf16.msra.mxu1 %v1117_v28 }
  0x30   : > { %1119 = vmatprep.subr.bf16.mxu1 %v1284_v3 }
  0x33   : > { %1121 = vmatpush1.bf16.msra.mxu1 %v1120_v31  ;;  %v747_v31 = vld [vmem:[%s1712_s6 + $0x10] sm:$0xff] }
  0x34   : > { %1122 = vmatprep.subr.bf16.mxu1 %v1284_v3  ;;  %v1133_v32 = vpack.c.bf16 %v747_v31, %v745_v30 }
  0x37   : > { %1124 = vmatpush1.bf16.msra.mxu1 %v1123_v34  ;;  %v749_v34 = vld [vmem:[%s1712_s6 + $0x20] sm:$0xf] }
  0x38   : > { %1125 = vmatprep.subr.bf16.mxu1 %v1284_v3 }
  0x3b   : > { %1127 = vmatpush1.bf16.msra.mxu1 %v1126_v37 }
  0x3c   : > { %1128 = vmatprep.subr.bf16.mxu1 %v1284_v3 }
  0x3f   : > { %1130 = vmatpush1.bf16.msra.mxu1 %v1129_v40  ;;  %v836_v40 = vld [vmem:[%s1708_s2 + $0x10] sm:$0xff] }
  0xed   : > { %v1420_v9 = vpop.f32.mrb[0].mxu1 }
  0xee   : > { %402 = vrot.lane.b32.xlu0 %v1420_v9, %s1287_s17  ;;  %v1084_v10 = vpop.f32.mrb[1].mxu1 }
 0x160   : > { %v1493_v41 = vpop.permute.xlu0 %402 }
 0x161   : > { %v443_v42 = vrot.slane %v1493_v41, 2  ;;  %v422_v43 = vmul.f32 %v1493_v41, %v1420_v9  ;;  %v413_v44 = vrot.slane %v1493_v41, 7  ;;  %v430_v45 = vrot.slane %v1493_v41, 1 }
 0x162   : > { %v405_v46 = vrot.slane %v1493_v41, 6  ;;  %v837_v41 = vld [vmem:[%s1708_s2 + $0x18] sm:$0xff] }
 0x163   : > { %v444_v47 = vmul.f32 %v443_v42, %v1420_v9  ;;  %424 = vrot.lane.b32.xlu1 %v422_v43, %s1288_s26  ;;  %v414_v48 = vmul.f32 %v413_v44, %v1420_v9  ;;  %v431_v50 = vmul.f32 %v430_v45, %v1420_v9  ;;  %v838_v43 = vld [vmem:[%s1708_s2 + $0x20] sm:$0xff] }
 0x164   : > { %v406_v49 = vmul.f32 %v405_v46, %v1420_v9 }
 0x165   : > { %445 = vst.msk [vmem:[#allocation2 + $0x8] sm:$0xff] %vm327_vm1, %v444_v47  ;;  %416 = vrot.lane.b32.xlu0 %v414_v48, %s1289_s12  ;;  %v841_v47 = vld [vmem:[%s1708_s2 + $0x38] sm:$0xff] }
 0x166   : > { %407 = vst.msk [vmem:[#allocation2] sm:$0xff] %vm327_vm1, %v406_v49  ;;  %v842_v49 = vld [vmem:[%s1708_s2 + $0x40] sm:$0xff] }
 0x167   : > { %433 = vrot.lane.b32.xlu1 %v431_v50, %s1287_s17  ;;  %v843_v50 = vld [vmem:[%s1708_s2 + $0x48] sm:$0xff] }
 0x16c   : > { %v454_v52 = vld [vmem:[#allocation2 + $0x8] sm:$0xff] }
 0x16d   : > { %v456_v53 = vmul.f32 %v454_v52, %v1521_v51  ;;  %v1148_v52 = vpack.c.bf16 %v843_v50, %v842_v49 }
 0x16f   : > { %1051 = vmatprep.mubr.msk.f32.mxu1 %vm327_vm1, %v456_v53  ;;  %v844_v53 = vld [vmem:[%s1708_s2 + $0x50] sm:$0xff] }
 0x1d5   : > { %v425_v54 = vpop.permute.xlu1 %424 }
 0x1d7   : > { %v417_v55 = vpop.permute.xlu0 %416 }
 0x1d8   : > { %420 = vst.msk [vmem:[#allocation2] sm:$0xff] %vm419_vm2, %v417_v55 }
 0x1d9   : > { %v434_v56 = vpop.permute.xlu1 %433  ;;  %428 = vst.msk [vmem:[#allocation2] sm:$0xff] %vm427_vm3, %v425_v54  ;;  %v845_v54 = vld [vmem:[%s1708_s2 + $0x58] sm:$0xff] }
 0x1da   : > { %437 = vst.msk [vmem:[#allocation2] sm:$0xff] %vm436_vm4, %v434_v56  ;;  %v1151_v55 = vpack.c.bf16 %v845_v54, %v844_v53  ;;  %v846_v56 = vld [vmem:[%s1708_s2 + $0x60] sm:$0xff] }
 0x1e1   : > { %v453_v58 = vld [vmem:[#allocation2] sm:$0xff] }
 0x1e2   : > { %v455_v59 = vmul.f32 %v453_v58, %v1528_v57  ;;  %v847_v58 = vld [vmem:[%s1708_s2 + $0x68] sm:$0xff] }
 0x1e4   : > { %549 = vmatmul.mubr.f32.vlgmr.msra.gmra.mrb[2].mxu1 %v455_v59  ;;  %v1154_v59 = vpack.c.bf16 %v847_v58, %v846_v56 }
 0x2b7   : > { %v550_v61 = vpop.f32.mrb[2].mxu1 }
 0x2b8   : > { %559 = vrot.lane.b32.xlu1 %v550_v61, %s1290_s21  ;;  %555 = vrot.lane.b32.xlu0 %v550_v61, %s1291_s22  ;;  %v552_v62 = vpop.f32.mrb[3].mxu1 }
 0x2bc   : > { %567 = vrot.lane.b32.xlu1 %v550_v61, %s1292_s23  ;;  %563 = vrot.lane.b32.xlu0 %v550_v61, %s1293_s24 }
 0x32a   : > { %v560_v63 = vpop.permute.xlu1 %559  ;;  %v556_v0 = vpop.permute.xlu0 %555 }
 0x32b   : > { %v558_v1 = vmax.f32 %v550_v61, %v556_v0  ;;  %v851_v0 = vld [vmem:[%s1708_s2 + $0x88] sm:$0xff] }
 0x32d   : > { %v562_v2 = vmax.f32 %v558_v1, %v560_v63  ;;  %v850_v63 = vld [vmem:[%s1708_s2 + $0x80] sm:$0xff] }
 0x32e   : > { %v564_v4 = vpop.permute.xlu0 %563  ;;  %v568_v7 = vpop.permute.xlu1 %567  ;;  %v1160_v1 = vpack.c.bf16 %v851_v0, %v850_v63 }
 0x32f   : > { %v566_v5 = vmax.f32 %v562_v2, %v564_v4  ;;  %v852_v2 = vld [vmem:[%s1708_s2 + $0x90] sm:$0xff]  ;;  %v853_v4 = vld [vmem:[%s1708_s2 + $0x98] sm:$0xff] }
 0x331   : > { %v570_v10 = vmax.f32 %v566_v5, %v568_v7  ;;  %v1163_v5 = vpack.c.bf16 %v853_v4, %v852_v2 }
 0x333   : > { %1088 = vmatmul.mubr.msk.f32.vlgmr.msra.gmra.mrb[0].mxu0 %vm572_vm6, %v570_v10 }
 0x334   : > { %1091 = vmatpush3.msk.msra.mxu0 %vm576_vm5, %v571_v60  ;;  %1092 = vmatprep.mubr.msk.f32.mxu0 %vm1285_vm0, %v1286_v6  ;;  %v848_v60 = vld [vmem:[%s1708_s2 + $0x70] sm:$0xff] }
 0x335   : > { %1132 = vmatprep.subr.bf16.mxu0 %v1131_v18  ;;  %v856_v18 = vsub.s32 0, %v855_v17 }
 0x406   : > { %v646_v11 = vpop.f32.mrb[0].mxu0 }
 0x407   : > { %v650_v12 = vsub.f32 %v550_v61, %v646_v11  ;;  %v1089_v13 = vpop.f32.mrb[1].mxu0  ;;  %v849_v61 = vld [vmem:[%s1708_s2 + $0x78] sm:$0xff] }
 0x408   : > { %v1157_v62 = vpack.c.bf16 %v849_v61, %v848_v60 }
 0x409   : > { %v651_v14 = vmul.f32 1.442695, %v650_v12 }
 0x40b   : > { %1214 = vpow2.f32 %v651_v14 }
 0x415   : > { %v1215_v15 = vpop.eup %1214 }
 0x416   : > { %658 = vrot.lane.b32.xlu1 %v1215_v15, %s1290_s21  ;;  %654 = vrot.lane.b32.xlu0 %v1215_v15, %s1291_s22  ;;  %s958_s22 = scalar_lea.sflag [#allocation5], %s309_s13 }
 0x41a   : > { %666 = vrot.lane.b32.xlu1 %v1215_v15, %s1292_s23  ;;  %662 = vrot.lane.b32.xlu0 %v1215_v15, %s1293_s24 }
 0x41e   : > { %447 = vrot.lane.b32.xlu1 %v443_v42, %s1287_s17  ;;  %409 = vrot.lane.b32.xlu0 %v405_v46, %s1287_s17  ;;  %v1139_v42 = vpack.c.bf16 %v837_v41, %v836_v40  ;;  %v840_v46 = vld [vmem:[%s1708_s2 + $0x30] sm:$0xff]  ;;  %s1061_s17 = sshll.u32 %s1361_s9, 7  ;;  %s1294_s9 = smov [#allocation4]  }
 0x41f   : > { %v1145_v48 = vpack.c.bf16 %v841_v47, %v840_v46  ;;  %s1663_s21 = scalar_lea.hbm %s1714_s8, %s1061_s17  ;;  %s1224_s24 = sshll.u32 %s1294_s9, 4  ;;  %s1225_s24 = int_to_ptr.vmem [resolvable:$false] %s1224_s24 }
 0x420   : > { %s1226_s10 = scalar_lea.vmem %s1225_s24, 256 }
 0x422   : > { %439 = vrot.lane.b32.xlu0 %v430_v45, %s1288_s26  ;;  %s311_s26 = scalar_lea.vmem [#allocation4], %s1046_s18 }
 0x423   : > { %s971_s19 = sshll.u32 %s311_s26, 4  ;;  %s1665_s19 = int_to_ptr.vmem [resolvable:$true] %s971_s19 }
 0x424   : > { %s1220_s23 = scalar_lea.vmem %s1665_s19, 128  ;;  %p1227_p0 = scmp.lt.s32.totalorder %s1665_s19, %s1225_s24 }
 0x425   : > { %p1221_p11 = scmp.ne.s32.totalorder %s1665_s19, %s1220_s23  ;;  %p1228_p1 = scmp.lt.s32.totalorder %s1226_s10, %s1220_s23 }
 0x427   : > { %p1222_p12 = pnand %p1221_p11, %p1378_p5  ;;  %p1229_p2 = por %p1228_p1, %p1227_p0 }
 0x429   : > { %p1223_p13 = pneg %p1222_p12 }
 0x42b   : > { %p1230_p3 = pnand %p1229_p2, %p1223_p13 }
 0x488   : > { %v659_v19 = vpop.permute.xlu1 %658  ;;  %v655_v20 = vpop.permute.xlu0 %654 }
 0x489   : > { %v657_v21 = vadd.f32 %v1215_v15, %v655_v20 }
 0x48b   : > { %v661_v22 = vadd.f32 %v659_v19, %v657_v21  ;;  %v322_v19 = vld [vmem:[%s1709_s3] sm:$0x7] }
 0x48c   : > { %v667_v23 = vpop.permute.xlu1 %666  ;;  %v663_v24 = vpop.permute.xlu0 %662  ;;  %v857_v20 = vrot.slane %v322_v19, %v856_v18 }
 0x48d   : > { %v665_v25 = vadd.f32 %v663_v24, %v661_v22 }
 0x48f   : > { %v669_v26 = vadd.f32 %v667_v23, %v665_v25 }
 0x490   : > { %v448_v27 = vpop.permute.xlu1 %447  ;;  %v410_v28 = vpop.permute.xlu0 %409 }
 0x491   : > { %1216 = vrcp.f32 %v669_v26  ;;  %450 = vst.msk [vmem:[#allocation3 + $0x8] sm:$0xff] %vm327_vm1, %v448_v27  ;;  %412 = vst.msk [vmem:[#allocation3] sm:$0xff] %vm327_vm1, %v410_v28 }
 0x492   : > { %421 = vst.msk [vmem:[#allocation3] sm:$0xff] %vm419_vm2, %v413_v44  ;;  %v839_v44 = vld [vmem:[%s1708_s2 + $0x28] sm:$0xff] }
 0x493   : > { %429 = vst.msk [vmem:[#allocation3] sm:$0xff] %vm427_vm3, %v1420_v9  ;;  %v750_v9 = vld [vmem:[%s1712_s6 + $0x28] sm:$0xf]  ;;  %v1142_v45 = vpack.c.bf16 %v839_v44, %v838_v43 }
 0x494   : > { %v440_v29 = vpop.permute.xlu0 %439 }
 0x495   : > { %442 = vst.msk [vmem:[#allocation3] sm:$0xff] %vm436_vm4, %v440_v29 }
 0x498   : > { %v458_v7 = vld [vmem:[#allocation3 + $0x8] sm:$0xff] }
 0x499   : > { %v460_v12 = vmul.f32 %v458_v7, %v1521_v51 }
 0x49b   : > { %v1217_v33 = vpop.eup %1216 }
 0x49c   : > { %1093 = vmatmul.mubr.msk.f32.vlgmr.msra.gmra.mrb[2].mxu0 %vm572_vm6, %v1217_v33  ;;  %v457_v10 = vld [vmem:[#allocation3] sm:$0xff]  ;;  %v953_v33 = vsub.s32 2, %v855_v17 }
 0x49d   : > { %1134 = vmatpush1.bf16.msra.mxu0 %v1133_v32  ;;  %825 = vmatprep.mubr.f32.mxu0 %v1286_v6  ;;  %v835_v6 = vld [vmem:[%s1708_s2 + $0x8] sm:$0xff]  ;;  %v459_v13 = vmul.f32 %v457_v10, %v1528_v57  ;;  %v948_v32 = vsub.s32 1, %v855_v17 }
 0x49e   : > { %1056 = vmatprep.subr.msk.mxu0 %vm576_vm5, %v750_v9  ;;  %v1136_v37 = vpack.c.bf16 %v835_v6, %v834_v35 }
 0x4a1   : > { %1057 = vmatpush1.msk.msra.mxu0 %vm576_vm5, %v749_v34  ;;  %v954_v34 = vrot.slane %v322_v19, %v953_v33 }
 0x4a2   : > { %1135 = vmatprep.subr.bf16.mxu0 %v1284_v3 }
 0x56f   : > { %v740_v36 = vpop.f32.mrb[2].mxu0 }
 0x570   : > { %v744_v38 = vmul.f32 %v1215_v15, %v740_v36  ;;  %v1094_v39 = vpop.f32.mrb[3].mxu0 }
 0x572   : > { %1058 = vmatmul.mubr.msk.f32.vlgmr.msra.gmra.mrb[4].mxu0 %vm751_vm7, %v744_v38 }
 0x573   : > { %1137 = vmatpush1.bf16.msra.mxu0 %v1136_v37 }
 0x574   : > { %1138 = vmatprep.subr.bf16.mxu0 %v1284_v3 }
 0x577   : > { %1140 = vmatpush1.bf16.msra.mxu0 %v1139_v42 }
 0x578   : > { %1141 = vmatprep.subr.bf16.mxu0 %v1284_v3 }
 0x57b   : > { %1143 = vmatpush1.bf16.msra.mxu0 %v1142_v45 }
 0x57c   : > { %1144 = vmatprep.subr.bf16.mxu0 %v1284_v3 }
 0x57f   : > { %1146 = vmatpush1.bf16.msra.mxu0 %v1145_v48 }
 0x580   : > { %1147 = vmatprep.subr.bf16.mxu0 %v1284_v3 }
 0x583   : > { %1149 = vmatpush1.bf16.msra.mxu0 %v1148_v52 }
 0x584   : > { %1150 = vmatprep.subr.bf16.mxu0 %v1284_v3 }
 0x587   : > { %1152 = vmatpush1.bf16.msra.mxu0 %v1151_v55 }
 0x588   : > { %1153 = vmatprep.subr.bf16.mxu0 %v1284_v3 }
 0x58b   : > { %1155 = vmatpush1.bf16.msra.mxu0 %v1154_v59 }
 0x58c   : > { %1156 = vmatprep.subr.bf16.mxu0 %v1284_v3 }
 0x58f   : > { %1158 = vmatpush1.bf16.msra.mxu0 %v1157_v62 }
 0x590   : > { %1159 = vmatprep.subr.bf16.mxu0 %v1284_v3 }
 0x593   : > { %1161 = vmatpush1.bf16.msra.mxu0 %v1160_v1 }
 0x594   : > { %1162 = vmatprep.subr.bf16.mxu0 %v1284_v3 }
 0x597   : > { %1164 = vmatpush1.bf16.msra.mxu0 %v1163_v5 }
 0x645   : > { %v827_v11 = vpop.f32.mrb[4].mxu0 }
 0x646   : > { %v829_v14 = vpop.f32.mrb[5].mxu0  ;;  %v832_v3 = vmul.f32 %v827_v11, %v459_v13 }
 0x647   : > { %v833_v15 = vmul.f32 %v829_v14, %v460_v12 }
 0x649   : > { %1059 = vmatprep.mubr.msk.f32.mxu0 %vm327_vm1, %v833_v15 }
 0x64a   : > { %926 = vmatmul.mubr.f32.vlgmr.msra.gmra.mrb[6].mxu0 %v832_v3 }
 0x71d   : > { %v927_v21 = vpop.f32.mrb[6].mxu0 }
 0x71e   : > { %v928_v22 = vadd.f32 %v927_v21, %v857_v20  ;;  %v929_v51 = vpop.f32.mrb[7].mxu0 }
 0x720   : > { %v931_v57 = vadd.f32 %v928_v22, %v1415_v8  ;;  %v949_v8 = vrot.slane %v322_v19, %v948_v32 }
 0x722   : > { %v932_v23 = vsel %vm327_vm1, %v931_v57, 0.0 }
 0x723   : > { %933 = vadd.xlane.f32.xlu1 %v932_v23 }
 0x7b0   : > { %v934_v24 = vpop.xlane.xlu1 %933 }
 0x7b1   : > { %v936_v25 = vmul.f32 0.03125, %v934_v24 }
 0x7b3   : > { %v937_v26 = vsub.f32 %v931_v57, %v936_v25 }
 0x7b5   : > { %v938_v27 = vmul.f32 %v937_v26, %v937_v26 }
 0x7b7   : > { %v939_v28 = vsel %vm327_vm1, %v938_v27, 0.0 }
 0x7b8   : > { %940 = vadd.xlane.f32.xlu0 %v939_v28 }
 0x845   : > { %v941_v29 = vpop.xlane.xlu0 %940 }
 0x846   : > { %v942_v30 = vmul.f32 0.03125, %v941_v29 }
 0x848   : > { %v943_v31 = vadd.f32 1e-06, %v942_v30 }
 0x84a   : > { %1218 = vrsqrt.f32 %v943_v31 }
 0x854   : > { %v1219_v9 = vpop.eup %1218 }
 0x855   : > { %v945_v35 = vmul.f32 %v1219_v9, %v937_v26 }
 0x857   : > { %v950_v6 = vmul.f32 %v949_v8, %v945_v35 }
 0x859   : > { %v955_v36 = vadd.f32 %v954_v34, %v950_v6 }
 0x85b   : > { %956 = vst.msk [vmem:[%s311_s26] sm:$0xff] %vm327_vm1, %v955_v36 }
 0x85c   : > { %1233 = shalt.err (!%p1230_p3)
}
 0x85d   : > { %s1234_s12 = scalar_lea.hbm %s1663_s21, 128  ;;  %s1238_s17 = scalar_lea.hbm %s1714_s8, 256 }
 0x85e   : > { %p1235_p4 = scmp.ne.s32.totalorder %s1663_s21, %s1234_s12  ;;  %p1239_p9 = scmp.lt.u32.totalorder %s1663_s21, %s1714_s8 }
 0x85f   : > { %p1240_p10 = scmp.lt.u32.totalorder %s1238_s17, %s1234_s12  ;;  %p1242_p12 = scmp.lt.u32.totalorder %s1234_s12, %s1663_s21 }
 0x860   : > { %p1236_p7 = pnand %p1235_p4, %p1378_p5 }
 0x861   : > { %p1241_p11 = por %p1240_p10, %p1239_p9 }
 0x862   : > { %p1237_p8 = pneg %p1236_p7 }
 0x863   : > { %p1243_p13 = por %p1242_p12, %p1241_p11 }
 0x865   : > { %p1244_p0 = pnand %p1243_p13, %p1237_p8 }
 0x867   : > { %1247 = shalt.err (!%p1244_p0)
}
 0x868   : > { %1165 = dma.vmem_to_hbm [thread:$0]  (%p1378_p5), %s1665_s19, 128, %s1663_s21, %s958_s22  }
 0x869 PF: > { %p1171_p1 = scmp.ge.s32.totalorder %s1282_s30, 2  ;;  %s983_s20 = sand.u32 1, %s1270_s27  }
 0x86a   : > { %s984_s23 = scalar_lea.sflag [#allocation5], %s983_s20 }
 0x86b   : > { %p1168_p2 = pnand %p1171_p1, %p1382_p6 }
 0x86d   : > { %1265 = dma.done.wait (!%p1168_p2), %s984_s23, 128  }
 0x86e   : > { %1267 = vsyncadd (!%p1168_p2), %s984_s23, 4294967168  ;;  %p18_p3 = scmp.ge.s32.totalorder %s1365_s11, 4   ;;  %s1717_s27 = smov %s1274_s28 }
 0x86f   : > { %s1718_s28 = smov %s1278_s29  ;;  %s1719_s29 = smov %s1376_s14 }
 0x870   : > { %s1720_s30 = smov %s1365_s11  ;;  %20 = sbr.rel (!%p18_p3) target bundleno = 3 (0x3), region = 90 }
 0x877   :  { %989 = vsyncpa [#allocation5], 1 }
 0x878   :  { %991 = vsyncpa [#allocation5 + $0x1], 1 }

</bundles_post_ra>
